<compile_context>
chip_gen: v7x
topology: tpu7x:2x2x1
jax: 0.10.0
libtpu: 0.0.40
codegen_flags: <defaults>
</compile_context>

<pallas_src>
import functools

import jax
import jax.numpy as jnp
from jax.experimental import pallas as pl
from jax.experimental.pallas import tpu as pltpu

_BN_EPS = 1e-5
_LANE = 128
_SUBLANE = 8


def _round_up(x, m):
    return ((x + m - 1) // m) * m


def _vmem_caps():
    """(working-set budget, vmem_limit_bytes), generation-aware with safe fallback."""
    try:
        cap = int(pltpu.get_tpu_info().vmem_capacity_bytes)
    except Exception:
        cap = 0
    if cap <= 0:
        cap = 64 * 1024 * 1024          # v7x per-TC worst case
    budget = min(int(cap * 0.55), 96 * 1024 * 1024)
    limit = min(int(cap * 0.85), 112 * 1024 * 1024)
    return budget, limit


def _choose_tile_n(n, hp, w_total, x_bytes, y_bytes, budget, max_rows):
    """Largest batch tile whose double-buffered pipeline fits the VMEM budget."""
    # x / y streams double-buffered + f32 temporaries; resident W double-buffered.
    per_row = (2 * x_bytes + 2 * y_bytes + 2 * 4) * hp
    avail = max(budget - 2 * w_total, per_row * _SUBLANE)
    tile = max(_SUBLANE, min(int(avail // per_row), 2048))
    if max_rows is not None:
        tile = min(tile, max(_round_up(int(max_rows), _SUBLANE), _SUBLANE))
    n8 = _round_up(n, _SUBLANE)
    if tile >= n8:
        return n8                        # whole (padded) batch in one tile
    if tile >= 256:
        tile = (tile // 256) * 256       # full 256-row MXU packing (v6e/v7x), 128-mult (v5e)
    elif tile >= 128:
        tile = 128
    else:
        tile = max((tile // _SUBLANE) * _SUBLANE, _SUBLANE)
    return tile


# ----------------------------- fused single kernel -----------------------------

def _make_fused_kernel(np_pad, hp, n_real):
    needs_mask = (np_pad != n_real)
    inv_n = 1.0 / float(n_real)

    def kernel(x_ref, w_ref, b_ref, g_ref, bt_ref, o_ref):
        xv = x_ref[...]
        # Linear: x @ W^T + b  (W was pre-transposed to [in, out] on the host).
        y = jnp.dot(xv, w_ref[...], preferred_element_type=jnp.float32) + b_ref[...]
        # Full-batch statistics (mask zero-padded rows so BN numerics are exact).
        if needs_mask:
            row = jax.lax.broadcasted_iota(jnp.int32, (np_pad, hp), 0)
            ym = jnp.where(row < n_real, y, 0.0)
        else:
            ym = y
        s = jnp.sum(ym, axis=0, keepdims=True)
        q = jnp.sum(ym * ym, axis=0, keepdims=True)
        mean = s * inv_n
        var = jnp.maximum(q * inv_n - mean * mean, 0.0)     # biased var (training BN)
        scale = g_ref[...] * jax.lax.rsqrt(var + _BN_EPS)   # rsqrt -> EUP (free slot)
        shift = bt_ref[...] - mean * scale
        # BN + ReLU + residual; only `out` touches HBM.
        o_ref[...] = jnp.maximum(y * scale + shift, 0.0) + xv.astype(jnp.float32)

    return kernel


# ----------------------------- tiled two-kernel path ---------------------------

def _make_linear_stats_kernel(tile_n, hp, n_real, y_dtype):
    last_has_pad = (n_real % tile_n) != 0

    def kernel(x_ref, w_ref, b_ref, y_ref, stats_ref):
        i = pl.program_id(0)
        y = jnp.dot(x_ref[...], w_ref[...], preferred_element_type=jnp.float32) + b_ref[...]
        y_ref[...] = y.astype(y_dtype)

        def write_stats(ym):
            s = jnp.sum(ym, axis=0, keepdims=True)
            q = jnp.sum(ym * ym, axis=0, keepdims=True)
            pad = jnp.zeros((_SUBLANE - 2, hp), jnp.float32)
            # Per-tile partial stats packed into one lane-dense (8, hp) block:
            # row 0 = sum, row 1 = sum of squares.  No carried accumulator, so
            # the batch axis stays "parallel" (megacore-shardable on v7x).
            stats_ref[0] = jnp.concatenate([s, q, pad], axis=0)

        if last_has_pad:
            last = pl.num_programs(0) - 1

            @pl.when(i == last)          # masking only on the tail tile
            def _():
                row = jax.lax.broadcasted_iota(jnp.int32, (tile_n, hp), 0) + i * tile_n
                write_stats(jnp.where(row < n_real, y, 0.0))

            @pl.when(i != last)
            def _():
                write_stats(y)
        else:
            write_stats(y)

    return kernel


def _bn_relu_residual_kernel(y_ref, x_ref, ss_ref, o_ref):
    bn = y_ref[...].astype(jnp.float32) * ss_ref[0:1, :] + ss_ref[1:2, :]
    o_ref[...] = jnp.maximum(bn, 0.0) + x_ref[...].astype(jnp.float32)


# ----------------------------------- wrapper -----------------------------------

@functools.partial(jax.jit, static_argnames=("use_bf16_matmul", "max_rows_per_tile"))
def residual_block(x, w, b, gamma, beta, *, use_bf16_matmul=True, max_rows_per_tile=None):
    """x: [N, H]; w: [H, H] PyTorch layout (out, in); b/gamma/beta: [H]."""
    n, h = x.shape
    hp = _round_up(h, _LANE)             # lane-dense feature dim
    f32 = jnp.float32
    op_dtype = jnp.bfloat16 if use_bf16_matmul else f32
    x_bytes = 2 if use_bf16_matmul else 4
    y_dtype = op_dtype                   # transport dtype of the y intermediate
    y_bytes = x_bytes

    budget, vmem_limit = _vmem_caps()

    # Parameters: transpose W once on host (no per-tile in-kernel transpose),
    # pad features to a lane-dense multiple of 128.
    w_t = jnp.transpose(w).astype(f32)   # [in, out]
    if hp != h:
        w_t = jnp.pad(w_t, ((0, hp - h), (0, hp - h)))
        b_p = jnp.pad(b.astype(f32), (0, hp - h))
        g_p = jnp.pad(gamma.astype(f32), (0, hp - h))
        bt_p = jnp.pad(beta.astype(f32), (0, hp - h))
    else:
        b_p, g_p, bt_p = b.astype(f32), gamma.astype(f32), beta.astype(f32)
    w_t = w_t.astype(op_dtype)
    b_p = b_p.reshape(1, hp)
    g_p = g_p.reshape(1, hp)
    bt_p = bt_p.reshape(1, hp)
    w_total = hp * hp * x_bytes

    x = x.astype(f32)

    # ------------- fully fused path: whole padded batch resident in VMEM -------------
    np_f = _round_up(n, _SUBLANE)
    fused_need = (2 * w_total + 2 * np_f * hp * x_bytes + 2 * np_f * hp * 4
                  + 2 * np_f * hp * 4 + (1 << 16))
    fused_ok = (fused_need <= budget) and (
        max_rows_per_tile is None or np_f <= _round_up(int(max_rows_per_tile), _SUBLANE))

    if fused_ok:
        x_p = jnp.pad(x, ((0, np_f - n), (0, hp - h))) if (np_f, hp) != (n, h) else x
        x_p = x_p.astype(op_dtype)       # pre-cast once in the wrapper
        vec = pl.BlockSpec((1, hp), lambda i: (0, 0))
        out = pl.pallas_call(
            _make_fused_kernel(np_f, hp, n),
            out_shape=jax.ShapeDtypeStruct((np_f, hp), f32),
            grid_spec=pltpu.PrefetchScalarGridSpec(
                num_scalar_prefetch=0,
                grid=(1,),
                in_specs=[pl.BlockSpec((np_f, hp), lambda i: (0, 0)),
                          pl.BlockSpec((hp, hp), lambda i: (0, 0)),
                          vec, vec, vec],
                out_specs=pl.BlockSpec((np_f, hp), lambda i: (0, 0)),
            ),
            compiler_params=pltpu.CompilerParams(
                dimension_semantics=("arbitrary",),
                vmem_limit_bytes=vmem_limit,
            ),
            cost_estimate=pl.CostEstimate(
                flops=2 * np_f * hp * hp + 10 * np_f * hp,
                transcendentals=hp,
                bytes_accessed=np_f * hp * (x_bytes + 4) + w_total + 3 * hp * 4,
            ),
        )(x_p, w_t, b_p, g_p, bt_p)
        return out[:n, :h] if (np_f, hp) != (n, h) else out

    # ------------------------------- tiled fallback ---------------------------------
    tile_n = _choose_tile_n(n, hp, w_total, x_bytes, y_bytes, budget, max_rows_per_tile)
    np_ = _round_up(n, tile_n)
    n_tiles = np_ // tile_n

    x_p = jnp.pad(x, ((0, np_ - n), (0, hp - h))) if (np_, hp) != (n, h) else x
    x_p = x_p.astype(op_dtype)

    tile_spec = pl.BlockSpec((tile_n, hp), lambda i: (i, 0))
    w_spec = pl.BlockSpec((hp, hp), lambda i: (0, 0))
    vec_spec = pl.BlockSpec((1, hp), lambda i: (0, 0))
    stats_spec = pl.BlockSpec((1, _SUBLANE, hp), lambda i: (i, 0, 0))

    # Kernel 1: linear + per-tile partial statistics ("parallel" batch axis).
    y, stats = pl.pallas_call(
        _make_linear_stats_kernel(tile_n, hp, n, y_dtype),
        out_shape=(jax.ShapeDtypeStruct((np_, hp), y_dtype),
                   jax.ShapeDtypeStruct((n_tiles, _SUBLANE, hp), f32)),
        grid_spec=pltpu.PrefetchScalarGridSpec(
            num_scalar_prefetch=0,
            grid=(n_tiles,),
            in_specs=[tile_spec, w_spec, vec_spec],
            out_specs=[tile_spec, stats_spec],
        ),
        compiler_params=pltpu.CompilerParams(
            dimension_semantics=("parallel",),
            vmem_limit_bytes=vmem_limit,
        ),
        cost_estimate=pl.CostEstimate(
            flops=2 * np_ * hp * hp,
            transcendentals=0,
            bytes_accessed=np_ * hp * (x_bytes + y_bytes) + w_total + hp * 4,
        ),
    )(x_p, w_t, b_p)

    # O(H) glue: reduce partial stats, fold BN into per-feature scale/shift.
    s = jnp.sum(stats[:, 0, :], axis=0)
    q = jnp.sum(stats[:, 1, :], axis=0)
    mean = s / n
    var = jnp.maximum(q / n - mean * mean, 0.0)             # biased variance
    scale = g_p[0] * jax.lax.rsqrt(var + _BN_EPS)
    shift = bt_p[0] - mean * scale
    ss = jnp.stack([scale, shift], axis=0)                  # one packed (2, hp) operand

    ss_spec = pl.BlockSpec((2, hp), lambda i: (0, 0))
    aliases = {} if use_bf16_matmul else {0: 0}             # reuse y's buffer for out (f32 mode)

    # Kernel 2: normalize + ReLU + residual add ("parallel" across TCs on v7x).
    out = pl.pallas_call(
        _bn_relu_residual_kernel,
        out_shape=jax.ShapeDtypeStruct((np_, hp), f32),
        grid_spec=pltpu.PrefetchScalarGridSpec(
            num_scalar_prefetch=0,
            grid=(n_tiles,),
            in_specs=[tile_spec, tile_spec, ss_spec],
            out_specs=tile_spec,
        ),
        compiler_params=pltpu.CompilerParams(
            dimension_semantics=("parallel",),
            vmem_limit_bytes=vmem_limit,
        ),
        input_output_aliases=aliases,
        cost_estimate=pl.CostEstimate(
            flops=4 * np_ * hp,
            transcendentals=0,
            bytes_accessed=np_ * hp * (y_bytes + x_bytes + 4) + 2 * hp * 4,
        ),
    )(y, x_p, ss)

    return out[:n, :h] if (np_, hp) != (n, h) else out


def residual_block_ref(x, w, b, gamma, beta):
    """Pure-JAX reference matching PyTorch semantics (training-mode BN)."""
    y = x @ w.T + b
    mean = jnp.mean(y, axis=0, keepdims=True)
    var = jnp.mean((y - mean) ** 2, axis=0, keepdims=True)
    bn = (y - mean) / jnp.sqrt(var + _BN_EPS) * gamma + beta
    return jnp.maximum(bn, 0.0) + x


if __name__ == "__main__":
    N, H = 8, 32   # batch, hidden_dim (Linear(H, H) / BatchNorm1d(H))
    key = jax.random.PRNGKey(0)
    kx, kw, kb, kg, kbt, kx2 = jax.random.split(key, 6)

    x = jax.random.normal(kx, (N, H), dtype=jnp.float32)
    w = jax.random.normal(kw, (H, H), dtype=jnp.float32) * (1.0 / jnp.sqrt(H))
    b = jax.random.normal(kb, (H,), dtype=jnp.float32) * 0.1
    gamma = 1.0 + 0.1 * jax.random.normal(kg, (H,), dtype=jnp.float32)
    beta = 0.1 * jax.random.normal(kbt, (H,), dtype=jnp.float32)

    ref = residual_block_ref(x, w, b, gamma, beta)

    # 1) Fused single-kernel path, f32 MXU operands (tight numerics).
    out = jax.block_until_ready(
        residual_block(x, w, b, gamma, beta, use_bf16_matmul=False))
    assert out.shape == (N, H)
    assert jnp.allclose(out, ref, atol=1e-3, rtol=1e-3), "fused f32 mismatch"

    # 2) Fused path with default bf16 MXU operands (operand-rounding tolerance).
    out_bf = jax.block_until_ready(residual_block(x, w, b, gamma, beta))
    assert jnp.allclose(out_bf, ref, atol=1e-1, rtol=5e-2), "fused bf16 mismatch"

    # 3) Tiled two-kernel path (forced 8-row tiles) with a non-tile-aligned batch:
    #    exercises parallel per-tile partial stats, last-tile masking, the glue
    #    reduction, and the y->out buffer aliasing (f32 mode).
    N2 = 20
    x2 = jax.random.normal(kx2, (N2, H), dtype=jnp.float32)
    ref2 = residual_block_ref(x2, w, b, gamma, beta)
    out2 = jax.block_until_ready(
        residual_block(x2, w, b, gamma, beta, use_bf16_matmul=False, max_rows_per_tile=8))
    assert jnp.allclose(out2, ref2, atol=1e-3, rtol=1e-3), "tiled f32 mismatch"

    out2_bf = jax.block_until_ready(
        residual_block(x2, w, b, gamma, beta, max_rows_per_tile=8))
    assert jnp.allclose(out2_bf, ref2, atol=1e-1, rtol=5e-2), "tiled bf16 mismatch"

    # 4) Fused path with padded (non-multiple-of-8) batch rows masked out of stats.
    x3 = x2[:12]
    ref3 = residual_block_ref(x3, w, b, gamma, beta)
    out3 = jax.block_until_ready(
        residual_block(x3, w, b, gamma, beta, use_bf16_matmul=False))
    assert jnp.allclose(out3, ref3, atol=1e-3, rtol=1e-3), "fused masked-batch mismatch"

    print("KERNEL_OK")
</pallas_src>

<mosaic_0001>
module attributes {stable_mosaic.version = 11 : i64} {
  func.func @kernel(%arg0: i32, %arg1: memref<8x128xf32, #tpu.memory_space<vmem>>, %arg2: memref<128x128xf32, #tpu.memory_space<vmem>>, %arg3: memref<1x128xf32, #tpu.memory_space<vmem>>, %arg4: memref<1x128xf32, #tpu.memory_space<vmem>>, %arg5: memref<1x128xf32, #tpu.memory_space<vmem>>, %arg6: memref<8x128xf32, #tpu.memory_space<vmem>>) attributes {dimension_semantics = [#tpu.dimension_semantics<arbitrary>], iteration_bounds = array<i64: 1>, scalar_prefetch = 0 : i64, scratch_operands = 0 : i64, tpu.core_type = #tpu.core_type<tc>, window_params = [{pipeline_mode = #tpu.pipeline_mode<synchronous>, transform_indices = @transform_0, window_bounds = array<i64: 8, 128>}, {pipeline_mode = #tpu.pipeline_mode<synchronous>, transform_indices = @transform_1, window_bounds = array<i64: 128, 128>}, {pipeline_mode = #tpu.pipeline_mode<synchronous>, transform_indices = @transform_2, window_bounds = array<i64: 1, 128>}, {pipeline_mode = #tpu.pipeline_mode<synchronous>, transform_indices = @transform_3, window_bounds = array<i64: 1, 128>}, {pipeline_mode = #tpu.pipeline_mode<synchronous>, transform_indices = @transform_4, window_bounds = array<i64: 1, 128>}, {pipeline_mode = #tpu.pipeline_mode<synchronous>, transform_indices = @transform_5, window_bounds = array<i64: 8, 128>}]} {
    %c0 = arith.constant 0 : index
    %c0_0 = arith.constant 0 : index
    %0 = vector.load %arg1[%c0, %c0_0] : memref<8x128xf32, #tpu.memory_space<vmem>>, vector<8x128xf32>
    %c0_1 = arith.constant 0 : index
    %c0_2 = arith.constant 0 : index
    %1 = vector.load %arg2[%c0_1, %c0_2] : memref<128x128xf32, #tpu.memory_space<vmem>>, vector<128x128xf32>
    %cst = arith.constant dense<0.000000e+00> : vector<8x128xf32>
    %2 = tpu.matmul %0, %1, %cst {dimension_numbers = #tpu.dot_dimension_numbers<[1], [0], [0], [1], [0, 0, 1, 1], [], []>} : vector<8x128xf32>, vector<128x128xf32>, vector<8x128xf32> -> vector<8x128xf32>
    %c0_3 = arith.constant 0 : index
    %c0_4 = arith.constant 0 : index
    %3 = vector.load %arg3[%c0_3, %c0_4] : memref<1x128xf32, #tpu.memory_space<vmem>>, vector<1x128xf32>
    %4 = vector.broadcast %3 : vector<1x128xf32> to vector<8x128xf32>
    %5 = arith.addf %2, %4 : vector<8x128xf32>
    %cst_5 = arith.constant dense<0.000000e+00> : vector<128xf32>
    %6 = vector.multi_reduction <add>, %5, %cst_5 [0] : vector<8x128xf32> to vector<128xf32>
    %7 = vector.shape_cast %6 : vector<128xf32> to vector<1x128xf32>
    %8 = arith.mulf %5, %5 : vector<8x128xf32>
    %cst_6 = arith.constant dense<0.000000e+00> : vector<128xf32>
    %9 = vector.multi_reduction <add>, %8, %cst_6 [0] : vector<8x128xf32> to vector<128xf32>
    %10 = vector.shape_cast %9 : vector<128xf32> to vector<1x128xf32>
    %cst_7 = arith.constant 1.250000e-01 : f32
    %11 = vector.broadcast %cst_7 : f32 to vector<1x128xf32>
    %12 = arith.mulf %7, %11 : vector<1x128xf32>
    %cst_8 = arith.constant 1.250000e-01 : f32
    %13 = vector.broadcast %cst_8 : f32 to vector<1x128xf32>
    %14 = arith.mulf %10, %13 : vector<1x128xf32>
    %15 = arith.mulf %12, %12 : vector<1x128xf32>
    %16 = arith.subf %14, %15 : vector<1x128xf32>
    %cst_9 = arith.constant 0.000000e+00 : f32
    %17 = vector.broadcast %cst_9 : f32 to vector<1x128xf32>
    %18 = arith.maximumf %16, %17 : vector<1x128xf32>
    %c0_10 = arith.constant 0 : index
    %c0_11 = arith.constant 0 : index
    %19 = vector.load %arg4[%c0_10, %c0_11] : memref<1x128xf32, #tpu.memory_space<vmem>>, vector<1x128xf32>
    %cst_12 = arith.constant 9.99999974E-6 : f32
    %20 = vector.broadcast %cst_12 : f32 to vector<1x128xf32>
    %21 = arith.addf %18, %20 : vector<1x128xf32>
    %22 = math.rsqrt %21 : vector<1x128xf32>
    %23 = arith.mulf %19, %22 : vector<1x128xf32>
    %c0_13 = arith.constant 0 : index
    %c0_14 = arith.constant 0 : index
    %24 = vector.load %arg5[%c0_13, %c0_14] : memref<1x128xf32, #tpu.memory_space<vmem>>, vector<1x128xf32>
    %25 = arith.mulf %12, %23 : vector<1x128xf32>
    %26 = arith.subf %24, %25 : vector<1x128xf32>
    %27 = vector.broadcast %23 : vector<1x128xf32> to vector<8x128xf32>
    %28 = arith.mulf %5, %27 : vector<8x128xf32>
    %29 = vector.broadcast %26 : vector<1x128xf32> to vector<8x128xf32>
    %30 = arith.addf %28, %29 : vector<8x128xf32>
    %cst_15 = arith.constant 0.000000e+00 : f32
    %31 = vector.broadcast %cst_15 : f32 to vector<8x128xf32>
    %32 = arith.maximumf %30, %31 : vector<8x128xf32>
    %33 = arith.addf %32, %0 : vector<8x128xf32>
    %c0_16 = arith.constant 0 : index
    %c0_17 = arith.constant 0 : index
    %34 = vector.load %arg6[%c0_16, %c0_17] : memref<8x128xf32, #tpu.memory_space<vmem>>, vector<8x128xf32>
    tpu.vector_store %arg6[%c0_16, %c0_17], %33 {strides = array<i32>} : memref<8x128xf32, #tpu.memory_space<vmem>>, vector<8x128xf32>,
    return
  }
  func.func @transform_0(%arg0: i32) -> (i32, i32) {
    %c0_i32 = arith.constant 0 : i32
    %c0_i32_0 = arith.constant 0 : i32
    %c0_i32_1 = arith.constant 0 : i32
    return %c0_i32, %c0_i32_0 : i32, i32
  }
  func.func @transform_1(%arg0: i32) -> (i32, i32) {
    %c0_i32 = arith.constant 0 : i32
    %c0_i32_0 = arith.constant 0 : i32
    %c0_i32_1 = arith.constant 0 : i32
    return %c0_i32, %c0_i32_0 : i32, i32
  }
  func.func @transform_2(%arg0: i32) -> (i32, i32) {
    %c0_i32 = arith.constant 0 : i32
    %c0_i32_0 = arith.constant 0 : i32
    %c0_i32_1 = arith.constant 0 : i32
    return %c0_i32, %c0_i32_0 : i32, i32
  }
  func.func @transform_3(%arg0: i32) -> (i32, i32) {
    %c0_i32 = arith.constant 0 : i32
    %c0_i32_0 = arith.constant 0 : i32
    %c0_i32_1 = arith.constant 0 : i32
    return %c0_i32, %c0_i32_0 : i32, i32
  }
  func.func @transform_4(%arg0: i32) -> (i32, i32) {
    %c0_i32 = arith.constant 0 : i32
    %c0_i32_0 = arith.constant 0 : i32
    %c0_i32_1 = arith.constant 0 : i32
    return %c0_i32, %c0_i32_0 : i32, i32
  }
  func.func @transform_5(%arg0: i32) -> (i32, i32) {
    %c0_i32 = arith.constant 0 : i32
    %c0_i32_0 = arith.constant 0 : i32
    %c0_i32_1 = arith.constant 0 : i32
    return %c0_i32, %c0_i32_0 : i32, i32
  }
}

</mosaic_0001>

<bundles_post_ra>
// kernel: residual_block.1
= control target key start
LH: loop header
LB: loop body
LE: loop exit
PB: predicated region body
PF: predicated region fallthrough
CT: control target
= control target key end

     0   :  { %v278_v3 = vmov 0.0|0.0   ;;  %vm279_vm0 = vmmov 0   ;;  %v280_v6 = vmov 0.0   ;;  %s384_s0 = inlined_call_operand.vmem [shape: f32[8,128], index: 0, kind: input, shape index: {}]   ;;  %s385_s1 = inlined_call_operand.vmem [shape: f32[128,128], index: 1, kind: input, shape index: {}]   ;;  %s386_s2 = inlined_call_operand.vmem [shape: f32[1,128], index: 2, kind: input, shape index: {}]   ;;  %s387_s3 = inlined_call_operand.vmem [shape: f32[1,128], index: 3, kind: input, shape index: {}]   ;;  %s388_s4 = inlined_call_operand.vmem [shape: f32[1,128], index: 4, kind: input, shape index: {}]   ;;  %s389_s5 = inlined_call_operand.hbm [shape: f32[8,128], index: 5, kind: output, shape index: {}]  }
   0x1   :  { %v22_v0 = vld [vmem:[%s385_s1] sm:$0xff]  ;;  %v23_v1 = vld [vmem:[%s385_s1 + $0x8] sm:$0xff]  ;;  %v24_v2 = vld [vmem:[%s385_s1 + $0x10] sm:$0xff]  ;;  %224 = vmatprep.subr.bf16.mxu0 %v278_v3  ;;  %221 = vmatprep.mubr.msk.f32.mxu0 %vm279_vm0, %v280_v6 }
   0x2   :  { %v225_v4 = vpack.c.bf16 %v23_v1, %v22_v0  ;;  %v25_v5 = vld [vmem:[%s385_s1 + $0x18] sm:$0xff]  ;;  %v26_v8 = vld [vmem:[%s385_s1 + $0x20] sm:$0xff]  ;;  %v27_v9 = vld [vmem:[%s385_s1 + $0x28] sm:$0xff] }
   0x3   :  { %v228_v7 = vpack.c.bf16 %v25_v5, %v24_v2 }
   0x4   :  { %226 = vmatpush3.bf16.msra.mxu0 %v225_v4 }
   0x5   :  { %227 = vmatprep.subr.bf16.mxu0 %v278_v3 }
   0x6   :  { %10 = vsyncpa [#allocation3], 0  ;;  %v231_v10 = vpack.c.bf16 %v27_v9, %v26_v8  ;;  %v28_v11 = vld [vmem:[%s385_s1 + $0x30] sm:$0xff]  ;;  %v29_v12 = vld [vmem:[%s385_s1 + $0x38] sm:$0xff]  ;;  %v141_v50 = vlaneseq  ;;  %s281_s30 = smov [#allocation2]  }
   0x7   :  { %v234_v13 = vpack.c.bf16 %v29_v12, %v28_v11  ;;  %v30_v14 = vld [vmem:[%s385_s1 + $0x40] sm:$0xff]  ;;  %v31_v15 = vld [vmem:[%s385_s1 + $0x48] sm:$0xff]  ;;  %v32_v17 = vld [vmem:[%s385_s1 + $0x50] sm:$0xff]  ;;  %s163_s6 = sshll.u32 %s281_s30, 4  ;;  %s164_s6 = int_to_ptr.vmem [resolvable:$true] %s163_s6 }
   0x8   :  { %229 = vmatpush3.bf16.msra.mxu0 %v228_v7  ;;  %v237_v16 = vpack.c.bf16 %v31_v15, %v30_v14  ;;  %v33_v18 = vld [vmem:[%s385_s1 + $0x58] sm:$0xff]  ;;  %v34_v20 = vld [vmem:[%s385_s1 + $0x60] sm:$0xff]  ;;  %v35_v21 = vld [vmem:[%s385_s1 + $0x68] sm:$0xff]  ;;  %v142_v51 = vshrl.u32 %v141_v50, 7  ;;  %p259_p1 = scmp.lt.s32.totalorder %s164_s6, %s164_s6 }
   0x9   :  { %230 = vmatprep.subr.bf16.mxu0 %v278_v3  ;;  %v240_v19 = vpack.c.bf16 %v33_v18, %v32_v17  ;;  %v243_v22 = vpack.c.bf16 %v35_v21, %v34_v20  ;;  %v36_v23 = vld [vmem:[%s385_s1 + $0x70] sm:$0xff]  ;;  %v37_v24 = vld [vmem:[%s385_s1 + $0x78] sm:$0xff]  ;;  %v21_v26 = vld [vmem:[%s384_s0] sm:$0xff] }
   0xa   :  { %v246_v25 = vpack.c.bf16 %v37_v24, %v36_v23  ;;  %v171_v27 = vld [vmem:[%s386_s2] ss:$0 sm:$0xff]  ;;  %v143_v53 = vsub.s32 0, %v142_v51 }
   0xb   :  { %v133_v52 = vld [vmem:[%s387_s3] sm:$0x1]  ;;  %s254_s3 = scalar_lea.vmem %s164_s6, 128 }
   0xc   :  { %232 = vmatpush3.bf16.msra.mxu0 %v231_v10  ;;  %v137_v56 = vld [vmem:[%s388_s4] sm:$0x1]  ;;  %p255_p0 = scmp.ne.s32.totalorder %s164_s6, %s254_s3  ;;  %p260_p2 = scmp.lt.s32.totalorder %s254_s3, %s254_s3 }
   0xd   :  { %233 = vmatprep.subr.bf16.mxu0 %v278_v3 }
   0xe   :  { %p261_p3 = por %p260_p2, %p259_p1 }
  0x10   :  { %235 = vmatpush3.bf16.msra.mxu0 %v234_v13  ;;  %p262_p4 = pnand %p261_p3, %p255_p0 }
  0x11   :  { %236 = vmatprep.subr.bf16.mxu0 %v278_v3 }
  0x14   :  { %238 = vmatpush3.bf16.msra.mxu0 %v237_v16 }
  0x15   :  { %239 = vmatprep.subr.bf16.mxu0 %v278_v3 }
  0x18   :  { %241 = vmatpush3.bf16.msra.mxu0 %v240_v19 }
  0x19   :  { %242 = vmatprep.subr.bf16.mxu0 %v278_v3 }
  0x1c   :  { %244 = vmatpush3.bf16.msra.mxu0 %v243_v22 }
  0x1d   :  { %245 = vmatprep.subr.bf16.mxu0 %v278_v3 }
  0x20   :  { %247 = vmatpush3.bf16.msra.mxu0 %v246_v25 }
  0x23   :  { %222 = vmatmul.mubr.f32.vlgmr.msra.gmra.mrb[0].mxu0 %v21_v26 }
  0xf6   :  { %v111_v28 = vpop.f32.mrb[0].mxu0 }
  0xf7   :  { %v112_v29 = vadd.f32 %v171_v27, %v111_v28  ;;  %v223_v30 = vpop.f32.mrb[1].mxu0 }
  0xf9   :  { %v115_v31 = vrot.slane %v112_v29, 4  ;;  %v121_v32 = vmul.f32 %v112_v29, %v112_v29 }
  0xfb   :  { %v116_v33 = vadd.f32 %v115_v31, %v112_v29  ;;  %v122_v34 = vrot.slane %v121_v32, 4 }
  0xfd   :  { %v117_v35 = vrot.slane %v116_v33, 2  ;;  %v123_v36 = vadd.f32 %v122_v34, %v121_v32 }
  0xff   :  { %v118_v37 = vadd.f32 %v117_v35, %v116_v33  ;;  %v124_v38 = vrot.slane %v123_v36, 2 }
 0x101   :  { %v119_v39 = vrot.slane %v118_v37, 1  ;;  %v125_v40 = vadd.f32 %v124_v38, %v123_v36 }
 0x103   :  { %v120_v41 = vadd.f32 %v119_v39, %v118_v37  ;;  %v126_v42 = vrot.slane %v125_v40, 1 }
 0x105   :  { %v127_v43 = vadd.f32 %v126_v42, %v125_v40  ;;  %v128_v44 = vmul.f32 0.125, %v120_v41 }
 0x107   :  { %v129_v45 = vmul.f32 0.125, %v127_v43  ;;  %v130_v46 = vmul.f32 %v128_v44, %v128_v44 }
 0x109   :  { %v131_v47 = vsub.f32 %v129_v45, %v130_v46 }
 0x10b   :  { %v132_v48 = vmax.f32 %v131_v47, 0.0 }
 0x10d   :  { %v134_v49 = vadd.f32 1e-05, %v132_v48 }
 0x10f   :  { %252 = vrsqrt.f32 %v134_v49 }
 0x119   :  { %v253_v54 = vpop.eup %252 }
 0x11a   :  { %v136_v55 = vmul.f32 %v253_v54, %v133_v52 }
 0x11c   :  { %v138_v57 = vmul.f32 %v136_v55, %v128_v44  ;;  %v144_v58 = vrot.slane %v136_v55, %v143_v53 }
 0x11e   :  { %v139_v59 = vsub.f32 %v137_v56, %v138_v57  ;;  %v146_v60 = vmul.f32 %v144_v58, %v112_v29 }
 0x120   :  { %v151_v61 = vrot.slane %v139_v59, %v143_v53 }
 0x122   :  { %v153_v62 = vadd.f32 %v151_v61, %v146_v60 }
 0x124   :  { %v154_v63 = vmax.f32 %v153_v62, 0.0 }
 0x126   :  { %v155_v0 = vadd.f32 %v154_v63, %v21_v26 }
 0x128   :  { %156 = vst [vmem:[#allocation2] sm:$0xff] %v155_v0 }
 0x129   :  { %265 = shalt.err (!%p262_p4)
}
 0x12a   :  { %s266_s8 = scalar_lea.hbm %s389_s5, 128 }
 0x12b   :  { %p267_p5 = scmp.ne.s32.totalorder %s389_s5, %s266_s8  ;;  %p270_p6 = scmp.lt.u32.totalorder %s266_s8, %s389_s5 }
 0x12d   :  { %p272_p7 = pnand %p270_p6, %p267_p5 }
 0x12f   :  { %275 = shalt.err (!%p272_p7)
}
 0x130   :  { %166 = dma.vmem_to_hbm [thread:$0]  %s164_s6, 128, %s389_s5, [#allocation3]  }
 0x131   :  { %276 = dma.done.wait [#allocation3], 128  }
 0x132   :  { %277 = vsyncadd [#allocation3], 4294967168 }
 0x133   :  { %170 = vsyncpa [#allocation3], 1 }

</bundles_post_ra>
